<compile_context>
chip_gen: v7x
topology: tpu7x:2x2x1
jax: 0.10.0
libtpu: 0.0.40
codegen_flags: <defaults>
</compile_context>

<pallas_src>
import functools

import jax
import jax.numpy as jnp
from jax.experimental import pallas as pl
from jax.experimental.pallas import tpu as pltpu

EPS = 1e-5


def sublayer_connect_kernel(x_ref, w_ref, b_ref, o_ref, normed_ref):
    # x_ref:      (TR, H)  f32 row tile (full hidden width, needed for LN + residual)
    # w_ref:      (H, TN)  bf16 weight column tile
    # b_ref:      (1, TN)  f32 bias column tile
    # o_ref:      (TR, TN) output tile
    # normed_ref: (TR, H)  bf16 scratch holding LayerNorm(x) for this row tile
    j = pl.program_id(1)
    tn = o_ref.shape[-1]

    # LayerNorm once per row tile (j == 0), cached across the N (column) axis.
    @pl.when(j == 0)
    def _():
        x = x_ref[...].astype(jnp.float32)
        inv_h = jnp.float32(1.0 / x.shape[-1])
        s = jnp.sum(x, axis=-1, keepdims=True)
        ss = jnp.sum(x * x, axis=-1, keepdims=True)
        mean = s * inv_h
        var = ss * inv_h - mean * mean
        normed = (x - mean) * jax.lax.rsqrt(var + EPS)
        # gamma=1, beta=0 (fresh nn.LayerNorm every forward) -> no affine.
        normed_ref[...] = normed.astype(jnp.bfloat16)

    # Example sublayer: dense projection on the MXU (bf16 operands, f32 acc).
    y = jnp.dot(normed_ref[...], w_ref[...], preferred_element_type=jnp.float32)
    y = y + b_ref[...]

    # Residual connection in f32 on the matching column slice of x.
    col0 = pl.multiple_of(j * tn, 128)
    x_res = x_ref[:, pl.ds(col0, tn)].astype(jnp.float32)
    o_ref[...] = (x_res + y).astype(o_ref.dtype)


def _round_up(a, m):
    return (a + m - 1) // m * m


@functools.partial(jax.jit, static_argnames=("tile_rows", "tile_n", "vmem_limit_bytes"))
def sublayer_connect(x, w, b, *, tile_rows=256, tile_n=None, vmem_limit_bytes=None):
    """x: (B, S, H) float32. Returns x + (LayerNorm(x) @ w + b)."""
    B, S, H = x.shape
    assert H % 128 == 0, "hidden dim must be a multiple of 128 (lane width)"
    R = B * S
    x2 = x.reshape(R, H)

    # Column tiling of the weight (bound VMEM on v7x for large H).
    tn = H if tile_n is None else tile_n
    assert H % tn == 0 and tn % 128 == 0

    # Row tiling: clamp to the (8-aligned) number of rows, pad the tail.
    tr = min(tile_rows, _round_up(R, 8))
    r_pad = _round_up(R, tr)
    if r_pad != R:
        x2 = jnp.pad(x2, ((0, r_pad - R), (0, 0)))

    w_bf16 = w.astype(jnp.bfloat16)          # halves weight DMA / VMEM footprint
    b2 = b.reshape(1, H).astype(jnp.float32)

    grid = (r_pad // tr, H // tn)

    cp_kwargs = dict(dimension_semantics=("parallel", "arbitrary"))
    if vmem_limit_bytes is not None:
        cp_kwargs["vmem_limit_bytes"] = vmem_limit_bytes

    out = pl.pallas_call(
        sublayer_connect_kernel,
        out_shape=jax.ShapeDtypeStruct((r_pad, H), x.dtype),
        grid_spec=pltpu.PrefetchScalarGridSpec(
            num_scalar_prefetch=0,
            grid=grid,
            in_specs=[
                pl.BlockSpec((tr, H), lambda i, j: (i, 0)),   # x rows (full width)
                pl.BlockSpec((H, tn), lambda i, j: (0, j)),   # weight column tile
                pl.BlockSpec((1, tn), lambda i, j: (0, j)),   # bias column tile
            ],
            out_specs=pl.BlockSpec((tr, tn), lambda i, j: (i, j)),
            scratch_shapes=[pltpu.VMEM((tr, H), jnp.bfloat16)],  # cached LayerNorm(x)
        ),
        compiler_params=pltpu.CompilerParams(**cp_kwargs),
    )(x2, w_bf16, b2)

    if r_pad != R:
        out = out[:R]
    return out.reshape(B, S, H)


def reference(x, w, b):
    mean = jnp.mean(x, axis=-1, keepdims=True)
    var = jnp.mean((x - mean) ** 2, axis=-1, keepdims=True)
    normed = (x - mean) * jax.lax.rsqrt(var + EPS)
    return x + (normed @ w + b)


if __name__ == "__main__":
    H = 128
    key = jax.random.PRNGKey(0)
    kx, kw, kb, kx2 = jax.random.split(key, 4)

    # Deterministic example sublayer parameters (dense H -> H).
    w = jax.random.normal(kw, (H, H), dtype=jnp.float32) * (1.0 / jnp.sqrt(H))
    b = jax.random.normal(kb, (H,), dtype=jnp.float32) * 0.01

    # Small shape consistent with the module's forward: (batch, seq, hidden).
    x = jax.random.normal(kx, (2, 8, H), dtype=jnp.float32)
    out = jax.block_until_ready(sublayer_connect(x, w, b))
    ref = reference(x, w, b.reshape(1, H))
    assert out.shape == x.shape
    assert jnp.allclose(out, ref, atol=5e-2, rtol=5e-2)

    # Second check: rows not divisible by the tile (exercises padding path +
    # multi-step parallel grid).
    x_big = jax.random.normal(kx2, (2, 300, H), dtype=jnp.float32)
    out_big = jax.block_until_ready(sublayer_connect(x_big, w, b))
    ref_big = reference(x_big, w, b.reshape(1, H))
    assert out_big.shape == x_big.shape
    assert jnp.allclose(out_big, ref_big, atol=5e-2, rtol=5e-2)

    print("KERNEL_OK")
</pallas_src>

<mosaic_0001>
module attributes {stable_mosaic.version = 11 : i64} {
  func.func @sublayer_connect_kernel(%arg0: i32, %arg1: i32, %arg2: memref<16x128xf32, #tpu.memory_space<vmem>>, %arg3: memref<128x128xbf16, #tpu.memory_space<vmem>>, %arg4: memref<1x128xf32, #tpu.memory_space<vmem>>, %arg5: memref<16x128xf32, #tpu.memory_space<vmem>>, %arg6: memref<16x128xbf16, #tpu.memory_space<vmem>>) attributes {dimension_semantics = [#tpu.dimension_semantics<parallel>, #tpu.dimension_semantics<arbitrary>], iteration_bounds = array<i64: 1, 1>, scalar_prefetch = 0 : i64, scratch_operands = 1 : i64, tpu.core_type = #tpu.core_type<tc>, window_params = [{transform_indices = @transform_0, window_bounds = array<i64: 16, 128>}, {transform_indices = @transform_1, window_bounds = array<i64: 128, 128>}, {transform_indices = @transform_2, window_bounds = array<i64: 1, 128>}, {transform_indices = @transform_3, window_bounds = array<i64: 16, 128>}]} {
    %c0_i32 = arith.constant 0 : i32
    %0 = arith.cmpi eq, %arg1, %c0_i32 : i32
    %1 = arith.extui %0 : i1 to i32
    %c0_i32_0 = arith.constant 0 : i32
    %2 = arith.cmpi ne, %1, %c0_i32_0 : i32
    scf.if %2 {
      %c0_9 = arith.constant 0 : index
      %c0_10 = arith.constant 0 : index
      %15 = vector.load %arg2[%c0_9, %c0_10] : memref<16x128xf32, #tpu.memory_space<vmem>>, vector<16x128xf32>
      %cst_11 = arith.constant dense<0.000000e+00> : vector<16xf32>
      %16 = vector.multi_reduction <add>, %15, %cst_11 [1] : vector<16x128xf32> to vector<16xf32>
      %17 = vector.shape_cast %16 : vector<16xf32> to vector<16x1xf32>
      %18 = arith.mulf %15, %15 : vector<16x128xf32>
      %cst_12 = arith.constant dense<0.000000e+00> : vector<16xf32>
      %19 = vector.multi_reduction <add>, %18, %cst_12 [1] : vector<16x128xf32> to vector<16xf32>
      %20 = vector.shape_cast %19 : vector<16xf32> to vector<16x1xf32>
      %cst_13 = arith.constant 7.812500e-03 : f32
      %21 = vector.broadcast %cst_13 : f32 to vector<16x1xf32>
      %22 = arith.mulf %17, %21 : vector<16x1xf32>
      %cst_14 = arith.constant 7.812500e-03 : f32
      %23 = vector.broadcast %cst_14 : f32 to vector<16x1xf32>
      %24 = arith.mulf %20, %23 : vector<16x1xf32>
      %25 = arith.mulf %22, %22 : vector<16x1xf32>
      %26 = arith.subf %24, %25 : vector<16x1xf32>
      %27 = vector.broadcast %22 : vector<16x1xf32> to vector<16x128xf32>
      %28 = arith.subf %15, %27 : vector<16x128xf32>
      %cst_15 = arith.constant 9.99999974E-6 : f32
      %29 = vector.broadcast %cst_15 : f32 to vector<16x1xf32>
      %30 = arith.addf %26, %29 : vector<16x1xf32>
      %31 = math.rsqrt %30 : vector<16x1xf32>
      %32 = vector.broadcast %31 : vector<16x1xf32> to vector<16x128xf32>
      %33 = arith.mulf %28, %32 : vector<16x128xf32>
      %34 = arith.truncf %33 : vector<16x128xf32> to vector<16x128xbf16>
      %c0_16 = arith.constant 0 : index
      %c0_17 = arith.constant 0 : index
      %35 = vector.load %arg6[%c0_16, %c0_17] : memref<16x128xbf16, #tpu.memory_space<vmem>>, vector<16x128xbf16>
      tpu.vector_store %arg6[%c0_16, %c0_17], %34 {strides = array<i32>} : memref<16x128xbf16, #tpu.memory_space<vmem>>, vector<16x128xbf16>,
    } else {
    }
    %c0 = arith.constant 0 : index
    %c0_1 = arith.constant 0 : index
    %3 = vector.load %arg6[%c0, %c0_1] : memref<16x128xbf16, #tpu.memory_space<vmem>>, vector<16x128xbf16>
    %c0_2 = arith.constant 0 : index
    %c0_3 = arith.constant 0 : index
    %4 = vector.load %arg3[%c0_2, %c0_3] : memref<128x128xbf16, #tpu.memory_space<vmem>>, vector<128x128xbf16>
    %cst = arith.constant dense<0.000000e+00> : vector<16x128xf32>
    %5 = tpu.matmul %3, %4, %cst {dimension_numbers = #tpu.dot_dimension_numbers<[1], [0], [0], [1], [0, 0, 1, 1], [], []>} : vector<16x128xbf16>, vector<128x128xbf16>, vector<16x128xf32> -> vector<16x128xf32>
    %c0_4 = arith.constant 0 : index
    %c0_5 = arith.constant 0 : index
    %6 = vector.load %arg4[%c0_4, %c0_5] : memref<1x128xf32, #tpu.memory_space<vmem>>, vector<1x128xf32>
    %7 = vector.broadcast %6 : vector<1x128xf32> to vector<16x128xf32>
    %8 = arith.addf %5, %7 : vector<16x128xf32>
    %c128_i32 = arith.constant 128 : i32
    %9 = arith.muli %arg1, %c128_i32 : i32
    %10 = tpu.assume_multiple %9, 128 : i32
    %c0_6 = arith.constant 0 : index
    %11 = arith.index_cast %10 : i32 to index
    %12 = vector.load %arg2[%c0_6, %11] : memref<16x128xf32, #tpu.memory_space<vmem>>, vector<16x128xf32>
    %13 = arith.addf %12, %8 : vector<16x128xf32>
    %c0_7 = arith.constant 0 : index
    %c0_8 = arith.constant 0 : index
    %14 = vector.load %arg5[%c0_7, %c0_8] : memref<16x128xf32, #tpu.memory_space<vmem>>, vector<16x128xf32>
    tpu.vector_store %arg5[%c0_7, %c0_8], %13 {strides = array<i32>} : memref<16x128xf32, #tpu.memory_space<vmem>>, vector<16x128xf32>,
    return
  }
  func.func @transform_0(%arg0: i32, %arg1: i32) -> (i32, i32) {
    %c0_i32 = arith.constant 0 : i32
    %c0_i32_0 = arith.constant 0 : i32
    return %arg0, %c0_i32 : i32, i32
  }
  func.func @transform_1(%arg0: i32, %arg1: i32) -> (i32, i32) {
    %c0_i32 = arith.constant 0 : i32
    %c0_i32_0 = arith.constant 0 : i32
    return %c0_i32, %arg1 : i32, i32
  }
  func.func @transform_2(%arg0: i32, %arg1: i32) -> (i32, i32) {
    %c0_i32 = arith.constant 0 : i32
    %c0_i32_0 = arith.constant 0 : i32
    return %c0_i32, %arg1 : i32, i32
  }
  func.func @transform_3(%arg0: i32, %arg1: i32) -> (i32, i32) {
    %c0_i32 = arith.constant 0 : i32
    return %arg0, %arg1 : i32, i32
  }
}

</mosaic_0001>

<bundles_post_ra>
// kernel: sublayer_connect.1
= control target key start
LH: loop header
LB: loop body
LE: loop exit
PB: predicated region body
PF: predicated region fallthrough
CT: control target
= control target key end

     0   :  { %v269_v3 = vmov 0.0   ;;  %s353_s0 = inlined_call_operand.vmem [shape: f32[16,128], index: 0, kind: input, shape index: {}]   ;;  %s354_s1 = inlined_call_operand.vmem [shape: bf16[128,128], index: 1, kind: input, shape index: {}]   ;;  %s355_s2 = inlined_call_operand.vmem [shape: f32[1,128], index: 2, kind: input, shape index: {}]   ;;  %s356_s3 = inlined_call_operand.hbm [shape: f32[16,128], index: 3, kind: output, shape index: {}]  }
   0x1   :  { %v297_v0 = vld [vmem:[%s353_s0] sm:$0xff]  ;;  %v302_v1 = vld [vmem:[%s353_s0 + $0x8] sm:$0xff]  ;;  %208 = vmatprep.subr.bf16.mxu0 %v269_v3 }
   0x2   :  { %22 = vadd.xlane.f32.xlu0 %v297_v0  ;;  %v26_v2 = vmul.f32 %v297_v0, %v297_v0  ;;  %v233_v4 = vld [vmem:[%s354_s1] sm:$0xff]   ;;  %v27_v5 = vmul.f32 %v302_v1, %v302_v1 }
   0x3   :  { %209 = vmatpush3.bf16.msra.mxu0 %v233_v4 }
   0x4   :  { %28 = vadd.xlane.f32.xlu1 %v26_v2  ;;  %210 = vmatprep.subr.bf16.mxu0 %v269_v3 }
   0x6   :  { %24 = vadd.xlane.f32.xlu0 %v302_v1 }
   0x7   :  { %8 = vsyncpa [#allocation4], 0  ;;  %v234_v6 = vld [vmem:[%s354_s1 + $0x8] sm:$0xff]   ;;  %v235_v7 = vld [vmem:[%s354_s1 + $0x10] sm:$0xff]   ;;  %vm270_vm0 = vmmov 0   ;;  %s271_s5 = smov [#allocation3]  }
   0x8   :  { %30 = vadd.xlane.f32.xlu1 %v27_v5  ;;  %211 = vmatpush3.bf16.msra.mxu0 %v234_v6  ;;  %v236_v8 = vld [vmem:[%s354_s1 + $0x18] sm:$0xff]   ;;  %v237_v9 = vld [vmem:[%s354_s1 + $0x20] sm:$0xff]   ;;  %v238_v10 = vld [vmem:[%s354_s1 + $0x28] sm:$0xff]   ;;  %s178_s6 = sshll.u32 %s271_s5, 4  ;;  %s179_s6 = int_to_ptr.vmem [resolvable:$true] %s178_s6 }
   0x9   :  { %212 = vmatprep.subr.bf16.mxu0 %v269_v3  ;;  %224 = vmatprep.mubr.msk.bf16.mxu0 %vm270_vm0, %v269_v3  ;;  %v239_v11 = vld [vmem:[%s354_s1 + $0x30] sm:$0xff]   ;;  %v240_v12 = vld [vmem:[%s354_s1 + $0x38] sm:$0xff]   ;;  %v190_v34 = vld [vmem:[%s355_s2] ss:$0 sm:$0xff]  ;;  %s245_s7 = scalar_lea.vmem %s179_s6, 256  ;;  %p250_p1 = scmp.lt.s32.totalorder %s179_s6, %s179_s6 }
   0xa   :  { %p246_p0 = scmp.ne.s32.totalorder %s179_s6, %s245_s7  ;;  %p251_p2 = scmp.lt.s32.totalorder %s245_s7, %s245_s7 }
   0xc   :  { %213 = vmatpush3.bf16.msra.mxu0 %v235_v7  ;;  %p252_p3 = por %p251_p2, %p250_p1 }
   0xd   :  { %214 = vmatprep.subr.bf16.mxu0 %v269_v3 }
   0xe   :  { %p253_p4 = pnand %p252_p3, %p246_p0 }
  0x10   :  { %215 = vmatpush3.bf16.msra.mxu0 %v236_v8 }
  0x11   :  { %216 = vmatprep.subr.bf16.mxu0 %v269_v3 }
  0x14   :  { %217 = vmatpush3.bf16.msra.mxu0 %v237_v9 }
  0x15   :  { %218 = vmatprep.subr.bf16.mxu0 %v269_v3 }
  0x18   :  { %219 = vmatpush3.bf16.msra.mxu0 %v238_v10 }
  0x19   :  { %220 = vmatprep.subr.bf16.mxu0 %v269_v3 }
  0x1c   :  { %221 = vmatpush3.bf16.msra.mxu0 %v239_v11 }
  0x1d   :  { %222 = vmatprep.subr.bf16.mxu0 %v269_v3 }
  0x20   :  { %223 = vmatpush3.bf16.msra.mxu0 %v240_v12 }
  0x8f   :  { %v23_v13 = vpop.xlane.xlu0 %22 }
  0x90   :  { %v32_v14 = vmul.f32 0.0078125, %v23_v13 }
  0x91   :  { %v29_v15 = vpop.xlane.xlu1 %28 }
  0x92   :  { %v36_v16 = vmul.f32 %v32_v14, %v32_v14  ;;  %v34_v17 = vmul.f32 0.0078125, %v29_v15  ;;  %v40_v28 = vsub.f32 %v297_v0, %v32_v14 }
  0x93   :  { %v25_v18 = vpop.xlane.xlu0 %24 }
  0x94   :  { %v38_v19 = vsub.f32 %v34_v17, %v36_v16  ;;  %v33_v20 = vmul.f32 0.0078125, %v25_v18 }
  0x95   :  { %v31_v21 = vpop.xlane.xlu1 %30 }
  0x96   :  { %v42_v22 = vadd.f32 1e-05, %v38_v19  ;;  %v37_v23 = vmul.f32 %v33_v20, %v33_v20  ;;  %v35_v24 = vmul.f32 0.0078125, %v31_v21  ;;  %v41_v29 = vsub.f32 %v302_v1, %v33_v20 }
  0x98   :  { %v39_v25 = vsub.f32 %v35_v24, %v37_v23  ;;  %241 = vrsqrt.f32 %v42_v22 }
  0x9a   :  { %v43_v26 = vadd.f32 1e-05, %v39_v25 }
  0x9c   :  { %243 = vrsqrt.f32 %v43_v26 }
  0xa2   :  { %v242_v27 = vpop.eup %241 }
  0xa3   :  { %v46_v31 = vmul.f32 %v242_v27, %v40_v28 }
  0xa6   :  { %v244_v30 = vpop.eup %243 }
  0xa7   :  { %v47_v32 = vmul.f32 %v244_v30, %v41_v29 }
  0xa9   :  { %v48_v33 = vpack.c.bf16 %v47_v32, %v46_v31 }
  0xab   :  { %225 = vmatmul.mubr.bf16.vlgmr.msra.gmra.mrb[0].mxu0 %v48_v33 }
 0x17e   :  { %v156_v35 = vpop.f32.mrb[0].mxu0 }
 0x17f   :  { %v157_v36 = vadd.f32 %v190_v34, %v156_v35  ;;  %v226_v37 = vpop.f32.mrb[1].mxu0 }
 0x180   :  { %v159_v38 = vpop.f32.mrb[2].mxu0 }
 0x181   :  { %v169_v39 = vadd.f32 %v157_v36, %v297_v0  ;;  %v160_v40 = vadd.f32 %v190_v34, %v159_v38  ;;  %v227_v41 = vpop.f32.mrb[3].mxu0 }
 0x183   :  { %171 = vst [vmem:[#allocation3] sm:$0xff] %v169_v39  ;;  %v170_v42 = vadd.f32 %v160_v40, %v302_v1 }
 0x185   :  { %172 = vst [vmem:[#allocation3 + $0x8] sm:$0xff] %v170_v42 }
 0x186   :  { %256 = shalt.err (!%p253_p4)
}
 0x187   :  { %s257_s9 = scalar_lea.hbm %s356_s3, 256 }
 0x188   :  { %p258_p5 = scmp.ne.s32.totalorder %s356_s3, %s257_s9  ;;  %p261_p6 = scmp.lt.u32.totalorder %s257_s9, %s356_s3 }
 0x18a   :  { %p263_p7 = pnand %p261_p6, %p258_p5 }
 0x18c   :  { %266 = shalt.err (!%p263_p7)
}
 0x18d   :  { %s272_s14 = smov 128   ;;  %s273_s15 = smov 8  }
 0x18e   :  { %184 = dma.vmem_to_hbm [thread:$0]  %s179_s6, 256, %s356_s3, [#allocation4], %s272_s14, %s272_s14, %s273_s15  }
 0x18f   :  { %267 = dma.done.wait [#allocation4], 256  }
 0x190   :  { %268 = vsyncadd [#allocation4], 4294967040 }
 0x191   :  { %188 = vsyncpa [#allocation4], 1 }

</bundles_post_ra>
